<compile_context>
chip_gen: v6e
topology: v6e:2x2x1
jax: 0.10.0
libtpu: 0.0.40
codegen_flags: <defaults>
</compile_context>

<pallas_src>
import functools

import jax
import jax.numpy as jnp
from jax.experimental import pallas as pl
from jax.experimental.pallas import tpu as pltpu

_LANE = 512            # lane-dense last dim (multiple of 128)
_MAX_TILE_ROWS = 1024  # 1024 x 512 x f32 = 2 MiB per input block per step


def _round_up(x, m):
    return ((x + m - 1) // m) * m


def _make_plan(n):
    """Static tiling plan derived from the (target) element count."""
    rows = _round_up(max(1, -(-n // _LANE)), 8)          # sublane-aligned rows
    tile_rows = min(_MAX_TILE_ROWS, rows)                # multiple of 8
    rows = _round_up(rows, tile_rows)
    row_blocks = rows // tile_rows
    # Outer parallel axis (2-way) only when it divides the work evenly.
    num_par = 2 if (row_blocks >= 2 and row_blocks % 2 == 0) else 1
    steps = row_blocks // num_par
    return {
        "n": n,
        "rows": rows,
        "tile_rows": tile_rows,
        "num_par": num_par,
        "steps": steps,
    }


def _to_tiles(a, plan):
    """Flatten NCHW (any shape) -> zero-padded (rows, _LANE) slab."""
    flat = a.reshape(-1)
    pad = plan["rows"] * _LANE - flat.shape[0]
    if pad:
        flat = jnp.concatenate([flat, jnp.zeros((pad,), flat.dtype)])
    return flat.reshape(plan["rows"], _LANE)


def _sse_kernel(x_ref, t_ref, out_ref, acc_ref, *, inv_n):
    """Accumulate per-lane partial sums of (x-t)^2; write scaled partials at end.

    Grid: (num_par [parallel], steps [arbitrary / reduction]).
    acc_ref: (8, _LANE) f32 VMEM scratch (per-core), reset at step == 0.
    out_ref: (8, _LANE) block, one per parallel chunk, written on last step.
    """
    step = pl.program_id(1)

    @pl.when(step == 0)
    def _():
        acc_ref[...] = jnp.zeros_like(acc_ref)

    d = x_ref[...].astype(jnp.float32) - t_ref[...].astype(jnp.float32)
    dd = d * d
    groups = dd.shape[0] // 8
    if groups == 1:
        acc_ref[...] += dd
    else:
        # Fold sublane-groups onto the (8, _LANE) accumulator: VPU-only adds
        # across vregs, no cross-lane/sublane XLU work per step.
        acc_ref[...] += jnp.sum(dd.reshape(groups, 8, dd.shape[1]), axis=0)

    @pl.when(step == pl.num_programs(1) - 1)
    def _():
        # Fold the divide-by-N into the final write (lane-dense, unmasked store).
        out_ref[...] = acc_ref[...] * inv_n


def _mse_pallas(x2d, t2d, plan):
    tile_rows = plan["tile_rows"]
    num_par = plan["num_par"]
    steps = plan["steps"]
    inv_n = 1.0 / float(plan["n"])

    kernel = functools.partial(_sse_kernel, inv_n=inv_n)

    partials = pl.pallas_call(
        kernel,
        out_shape=jax.ShapeDtypeStruct((num_par * 8, _LANE), jnp.float32),
        grid_spec=pltpu.PrefetchScalarGridSpec(
            num_scalar_prefetch=0,
            grid=(num_par, steps),
            in_specs=[
                pl.BlockSpec((tile_rows, _LANE), lambda p, s: (p * steps + s, 0)),
                pl.BlockSpec((tile_rows, _LANE), lambda p, s: (p * steps + s, 0)),
            ],
            out_specs=pl.BlockSpec((8, _LANE), lambda p, s: (p, 0)),
            scratch_shapes=[pltpu.VMEM((8, _LANE), jnp.float32)],
        ),
        compiler_params=pltpu.CompilerParams(
            dimension_semantics=("parallel", "arbitrary"),
            vmem_limit_bytes=32 << 20,  # safe on v5e/v6e/v7x; blocks use ~8 MiB
        ),
    )(x2d, t2d)

    # Tiny final reduce of the already-mean-scaled per-lane partials.
    return jnp.sum(partials)


class ContentLoss:
    """JAX/Pallas port of the PyTorch ContentLoss module."""

    def __init__(self, target_img):
        # target_img: NCHW array, "detached" (just a constant here).
        self.target_image = jnp.asarray(target_img)
        self._plan = _make_plan(int(self.target_image.size))
        # Pre-pad/reshape the constant target once.
        self._target2d = _to_tiles(self.target_image, self._plan)
        # F.mse_loss(target, target) == 0.0
        self.loss = jnp.float32(0.0)

    def __call__(self, input_img):
        input_img = jnp.asarray(input_img)
        assert input_img.shape == self.target_image.shape
        x2d = _to_tiles(input_img, self._plan)
        # TODO(synk): mutating self.loss is a Python side effect; under jax.jit,
        # return the loss explicitly instead of storing it on the module.
        self.loss = _mse_pallas(x2d, self._target2d, self._plan)
        return input_img  # passthrough, exactly like the PyTorch module


if __name__ == "__main__":
    # Small shapes consistent with an image-style module: batch=2, channels=4, 16x16.
    key = jax.random.PRNGKey(0)
    k_tgt, k_in = jax.random.split(key)
    shape = (2, 4, 16, 16)  # NCHW

    target = jax.random.normal(k_tgt, shape, dtype=jnp.float32)
    x = jax.random.normal(k_in, shape, dtype=jnp.float32)

    module = ContentLoss(target)
    out = module(x)

    out = jax.block_until_ready(out)
    loss = jax.block_until_ready(module.loss)

    # Correctness check against plain-JAX reference MSE.
    ref_loss = jnp.mean((x - target) ** 2)
    assert out.shape == x.shape
    assert bool(jnp.allclose(out, x)), "forward must return input unchanged"
    assert bool(jnp.allclose(loss, ref_loss, rtol=1e-5, atol=1e-6)), (loss, ref_loss)

    print("KERNEL_OK")
</pallas_src>

<mosaic_0001>
module attributes {stable_mosaic.version = 11 : i64} {
  func.func @_sse_kernel(%arg0: i32, %arg1: i32, %arg2: memref<8x512xf32, #tpu.memory_space<vmem>>, %arg3: memref<8x512xf32, #tpu.memory_space<vmem>>, %arg4: memref<8x512xf32, #tpu.memory_space<vmem>>, %arg5: memref<8x512xf32, #tpu.memory_space<vmem>>) attributes {dimension_semantics = [#tpu.dimension_semantics<parallel>, #tpu.dimension_semantics<arbitrary>], iteration_bounds = array<i64: 1, 1>, scalar_prefetch = 0 : i64, scratch_operands = 1 : i64, tpu.core_type = #tpu.core_type<tc>, window_params = [{transform_indices = @transform_0, window_bounds = array<i64: 8, 512>}, {transform_indices = @transform_1, window_bounds = array<i64: 8, 512>}, {transform_indices = @transform_2, window_bounds = array<i64: 8, 512>}]} {
    %c0_i32 = arith.constant 0 : i32
    %0 = arith.cmpi eq, %arg1, %c0_i32 : i32
    %1 = arith.extui %0 : i1 to i32
    %c0_i32_0 = arith.constant 0 : i32
    %2 = arith.cmpi ne, %1, %c0_i32_0 : i32
    scf.if %2 {
      %cst = arith.constant 0.000000e+00 : f32
      %13 = vector.broadcast %cst : f32 to vector<8x512xf32>
      %c0_10 = arith.constant 0 : index
      %c0_11 = arith.constant 0 : index
      %14 = vector.load %arg5[%c0_10, %c0_11] : memref<8x512xf32, #tpu.memory_space<vmem>>, vector<8x512xf32>
      tpu.vector_store %arg5[%c0_10, %c0_11], %13 {strides = array<i32>} : memref<8x512xf32, #tpu.memory_space<vmem>>, vector<8x512xf32>,
    } else {
    }
    %c0 = arith.constant 0 : index
    %c0_1 = arith.constant 0 : index
    %3 = vector.load %arg2[%c0, %c0_1] : memref<8x512xf32, #tpu.memory_space<vmem>>, vector<8x512xf32>
    %c0_2 = arith.constant 0 : index
    %c0_3 = arith.constant 0 : index
    %4 = vector.load %arg3[%c0_2, %c0_3] : memref<8x512xf32, #tpu.memory_space<vmem>>, vector<8x512xf32>
    %5 = arith.subf %3, %4 : vector<8x512xf32>
    %6 = arith.mulf %5, %5 : vector<8x512xf32>
    %c0_4 = arith.constant 0 : index
    %c0_5 = arith.constant 0 : index
    %7 = vector.load %arg5[%c0_4, %c0_5] : memref<8x512xf32, #tpu.memory_space<vmem>>, vector<8x512xf32>
    %8 = arith.addf %7, %6 : vector<8x512xf32>
    %c0_6 = arith.constant 0 : index
    %c0_7 = arith.constant 0 : index
    %9 = vector.load %arg5[%c0_6, %c0_7] : memref<8x512xf32, #tpu.memory_space<vmem>>, vector<8x512xf32>
    tpu.vector_store %arg5[%c0_6, %c0_7], %8 {strides = array<i32>} : memref<8x512xf32, #tpu.memory_space<vmem>>, vector<8x512xf32>,
    %c0_i32_8 = arith.constant 0 : i32
    %10 = arith.cmpi eq, %arg1, %c0_i32_8 : i32
    %11 = arith.extui %10 : i1 to i32
    %c0_i32_9 = arith.constant 0 : i32
    %12 = arith.cmpi ne, %11, %c0_i32_9 : i32
    scf.if %12 {
      %c0_10 = arith.constant 0 : index
      %c0_11 = arith.constant 0 : index
      %13 = vector.load %arg5[%c0_10, %c0_11] : memref<8x512xf32, #tpu.memory_space<vmem>>, vector<8x512xf32>
      %cst = arith.constant 4.8828125E-4 : f32
      %14 = vector.broadcast %cst : f32 to vector<8x512xf32>
      %15 = arith.mulf %13, %14 : vector<8x512xf32>
      %c0_12 = arith.constant 0 : index
      %c0_13 = arith.constant 0 : index
      %16 = vector.load %arg4[%c0_12, %c0_13] : memref<8x512xf32, #tpu.memory_space<vmem>>, vector<8x512xf32>
      tpu.vector_store %arg4[%c0_12, %c0_13], %15 {strides = array<i32>} : memref<8x512xf32, #tpu.memory_space<vmem>>, vector<8x512xf32>,
    } else {
    }
    return
  }
  func.func @transform_0(%arg0: i32, %arg1: i32) -> (i32, i32) {
    %c1_i32 = arith.constant 1 : i32
    %0 = arith.muli %arg0, %c1_i32 : i32
    %1 = arith.addi %0, %arg1 : i32
    %c0_i32 = arith.constant 0 : i32
    %c0_i32_0 = arith.constant 0 : i32
    return %1, %c0_i32 : i32, i32
  }
  func.func @transform_1(%arg0: i32, %arg1: i32) -> (i32, i32) {
    %c1_i32 = arith.constant 1 : i32
    %0 = arith.muli %arg0, %c1_i32 : i32
    %1 = arith.addi %0, %arg1 : i32
    %c0_i32 = arith.constant 0 : i32
    %c0_i32_0 = arith.constant 0 : i32
    return %1, %c0_i32 : i32, i32
  }
  func.func @transform_2(%arg0: i32, %arg1: i32) -> (i32, i32) {
    %c0_i32 = arith.constant 0 : i32
    %c0_i32_0 = arith.constant 0 : i32
    return %arg0, %c0_i32 : i32, i32
  }
}

</mosaic_0001>

<bundles_post_ra>
// kernel: tpu_custom_call.1
= control target key start
LH: loop header
LB: loop body
LE: loop exit
PB: predicated region body
PF: predicated region fallthrough
CT: control target
= control target key end

     0   :  { %7 = vsyncpa [#allocation4], 0  ;;  %s209_s0 = inlined_call_operand.hbm [shape: f32[8,512], index: 0, kind: input, shape index: {}]   ;;  %s210_s1 = inlined_call_operand.hbm [shape: f32[8,512], index: 1, kind: input, shape index: {}]   ;;  %s211_s2 = inlined_call_operand.hbm [shape: f32[8,512], index: 2, kind: output, shape index: {}]  }
   0x1   :  { %8 = vsyncpa [#allocation7], 0 }
   0x2   :  { %9 = vsyncpa [#allocation5], 0  ;;  %s182_s9 = smov [#allocation3]   ;;  %s183_s11 = smov [#allocation6]  }
   0x3   :  { %s20_s10 = sshll.u32 %s182_s9, 4  ;;  %s34_s12 = sshll.u32 %s183_s11, 4  ;;  %s21_s10 = int_to_ptr.vmem [resolvable:$true] %s20_s10  ;;  %s35_s12 = int_to_ptr.vmem [resolvable:$true] %s34_s12 }
   0x4   :  { %s124_s13 = scalar_lea.vmem %s21_s10, 512  ;;  %p129_p1 = scmp.lt.s32.totalorder %s21_s10, %s21_s10 }
   0x5   :  { %p125_p0 = scmp.ne.s32.totalorder %s21_s10, %s124_s13  ;;  %p130_p2 = scmp.lt.s32.totalorder %s124_s13, %s124_s13 }
   0x7   :  { %p131_p3 = por %p130_p2, %p129_p1 }
   0x9   :  { %p132_p4 = pnand %p131_p3, %p125_p0 }
   0xb   :  { %135 = shalt.err (!%p132_p4)
}
   0xc   :  { %23 = dma.hbm_to_vmem [thread:$0]  %s209_s0, 512, %s21_s10, [#allocation4]  }
   0xd   :  { %s144_s16 = scalar_lea.vmem %s35_s12, 512  ;;  %p149_p6 = scmp.lt.s32.totalorder %s35_s12, %s35_s12 }
   0xe   :  { %p145_p5 = scmp.ne.s32.totalorder %s35_s12, %s144_s16  ;;  %p150_p7 = scmp.lt.s32.totalorder %s144_s16, %s144_s16 }
  0x10   :  { %p151_p8 = por %p150_p7, %p149_p6 }
  0x12   :  { %p152_p9 = pnand %p151_p8, %p145_p5 }
  0x14   :  { %155 = shalt.err (!%p152_p9)
}
  0x15   :  { %37 = dma.hbm_to_vmem [thread:$0]  %s210_s1, 512, %s35_s12, [#allocation7]  }
  0x16   :  { %176 = dma.done.wait [#allocation4], 512  }
  0x17   :  { %177 = vsyncadd [#allocation4], 4294966784 }
  0x18   :  { %178 = dma.done.wait [#allocation7], 512  }
  0x19   :  { %179 = vsyncadd [#allocation7], 4294966784  ;;  %v54_v0 = vld [vmem:[#allocation3] sm:$0xff]  ;;  %v55_v2 = vld [vmem:[#allocation3 + $0x8] sm:$0xff]  ;;  %s184_s0 = smov [#allocation8]  }
  0x1a   :  { %v58_v1 = vld [vmem:[#allocation6] sm:$0xff]  ;;  %v59_v4 = vld [vmem:[#allocation6 + $0x8] sm:$0xff]  ;;  %v56_v5 = vld [vmem:[#allocation3 + $0x10] sm:$0xff]  ;;  %s103_s1 = sshll.u32 %s184_s0, 4  ;;  %s104_s1 = int_to_ptr.vmem [resolvable:$true] %s103_s1 }
  0x1b   :  { %v62_v3 = vsub.f32 %v54_v0, %v58_v1  ;;  %v60_v6 = vld [vmem:[#allocation6 + $0x10] sm:$0xff]  ;;  %v63_v7 = vsub.f32 %v55_v2, %v59_v4  ;;  %v57_v9 = vld [vmem:[#allocation3 + $0x18] sm:$0xff]  ;;  %s156_s19 = scalar_lea.vmem %s104_s1, 512  ;;  %p161_p11 = scmp.lt.s32.totalorder %s104_s1, %s104_s1 }
  0x1c   :  { %v64_v8 = vsub.f32 %v56_v5, %v60_v6  ;;  %v61_v10 = vld [vmem:[#allocation6 + $0x18] sm:$0xff]  ;;  %p157_p10 = scmp.ne.s32.totalorder %s104_s1, %s156_s19  ;;  %p162_p12 = scmp.lt.s32.totalorder %s156_s19, %s156_s19 }
  0x1d   :  { %v66_v11 = vmul.f32 %v62_v3, %v62_v3  ;;  %v65_v12 = vsub.f32 %v57_v9, %v61_v10  ;;  %v67_v13 = vmul.f32 %v63_v7, %v63_v7 }
  0x1e   :  { %v68_v14 = vmul.f32 %v64_v8, %v64_v8  ;;  %p163_p13 = por %p162_p12, %p161_p11 }
  0x1f   :  { %v89_v15 = vmul.f32 0.00048828125, %v66_v11  ;;  %v69_v16 = vmul.f32 %v65_v12, %v65_v12  ;;  %v90_v17 = vmul.f32 0.00048828125, %v67_v13 }
  0x20   :  { %v91_v18 = vmul.f32 0.00048828125, %v68_v14  ;;  %p164_p0 = pnand %p163_p13, %p157_p10 }
  0x21   :  { %93 = vst [vmem:[#allocation8] sm:$0xff] %v89_v15  ;;  %v92_v19 = vmul.f32 0.00048828125, %v69_v16  ;;  %94 = vst [vmem:[#allocation8 + $0x8] sm:$0xff] %v90_v17 }
  0x22   :  { %95 = vst [vmem:[#allocation8 + $0x10] sm:$0xff] %v91_v18 }
  0x23   :  { %96 = vst [vmem:[#allocation8 + $0x18] sm:$0xff] %v92_v19 }
  0x24   :  { %167 = shalt.err (!%p164_p0)
}
  0x25   :  { %106 = dma.vmem_to_hbm [thread:$0]  %s104_s1, 512, %s211_s2, [#allocation5]  }
  0x26   :  { %180 = dma.done.wait [#allocation5], 512  }
  0x27   :  { %181 = vsyncadd [#allocation5], 4294966784 }
  0x28   :  { %110 = vsyncpa [#allocation4], 1 }
  0x29   :  { %111 = vsyncpa [#allocation7], 1 }
  0x2a   :  { %112 = vsyncpa [#allocation5], 1 }

</bundles_post_ra>
